<compile_context>
chip_gen: v7x
topology: tpu7x:2x2x1
jax: 0.10.0
libtpu: 0.0.40
codegen_flags: <defaults>
</compile_context>

<pallas_src>
import jax
import jax.numpy as jnp
from jax import lax
from jax.experimental import pallas as pl
from jax.experimental.pallas import tpu as pltpu

LANE = 128     # vreg lane width -> lane-dense output tile
SUBLANE = 8    # f32 sublane height
MAX_TB = 1024  # batch tile ceiling (85%+ of HBM roofline regime)


def _round_up(n, m):
    return (n + m - 1) // m * m


def _pick_batch_tile(bpad8, cap):
    """Largest multiple-of-8 divisor of bpad8 that is <= cap (cap >= 8)."""
    units = bpad8 // SUBLANE
    best = 1
    d = 1
    while d * d <= units:
        if units % d == 0:
            for q in (d, units // d):
                if q * SUBLANE <= cap and q > best:
                    best = q
        d += 1
    return best * SUBLANE


def _linear_kernel(x_ref, w_ref, b_ref, o_ref, acc_ref):
    # Grid = (batch tiles, K tiles).  Accumulate x_tile @ w_tile into a
    # resident f32 scratch; add bias and store on the last K step.
    k = pl.program_id(1)

    @pl.when(k == 0)
    def _init():
        acc_ref[...] = jnp.zeros_like(acc_ref)

    acc_ref[...] += lax.dot_general(
        x_ref[...], w_ref[...],                       # [TB, TK] @ [TK, Lpad]
        dimension_numbers=(((1,), (0,)), ((), ())),   # plain (M,K)x(K,N) MXU feed
        preferred_element_type=jnp.float32,
    )

    @pl.when(k == pl.num_programs(1) - 1)
    def _finalize():
        o_ref[...] = (acc_ref[...] + b_ref[...]).astype(o_ref.dtype)


def sentiment_classifier_forward(x, weight, bias, *,
                                 vmem_budget_bytes=24 * 1024 * 1024):
    """nn.Linear forward (y = x @ weight.T + bias) as a tiled Pallas TPU kernel."""
    B, D = x.shape
    L, D2 = weight.shape
    assert D == D2, "weight inner dim must match x feature dim"

    # ---- one-time wrapper-side weight/bias prep (grid-constant) -------------
    Lpad = _round_up(max(L, 1), LANE)   # keep at exactly 128 for small L
    w_t = jnp.zeros((D, Lpad), dtype=weight.dtype).at[:, :L].set(weight.T)
    b_pad = jnp.zeros((1, Lpad), dtype=bias.dtype).at[0, :L].set(bias)

    # ---- batch: pad only to the 8-row sublane (<= 7 zero rows) --------------
    Bpad8 = _round_up(max(B, 1), SUBLANE)
    if Bpad8 != B:
        x = jnp.pad(x, ((0, Bpad8 - B), (0, 0)))

    xi = x.dtype.itemsize
    wi = w_t.dtype.itemsize
    oi = xi  # output dtype follows x

    # ---- choose (TB, TK) from an explicit VMEM budget ------------------------
    # Budget: 2*TB*TK (x dbl-buf) + 2*TK*Lpad (weight bufs) + bias
    #         + 2*TB*Lpad (out dbl-buf) + TB*Lpad*4 (f32 accumulator).
    tk_candidates = [D]
    if D % LANE == 0:
        for m in range(min(D // LANE, 64), 0, -1):
            tk = m * LANE
            if D % tk == 0 and tk != D:
                tk_candidates.append(tk)

    best = None  # (TB, TK)
    for TK in tk_candidates:
        fixed = 2 * TK * Lpad * wi + 2 * Lpad * bias.dtype.itemsize
        per_row = 2 * TK * xi + 2 * Lpad * oi + Lpad * 4
        avail = vmem_budget_bytes - fixed
        if avail <= 0:
            continue
        tb_cap = min(MAX_TB, avail // per_row)
        if tb_cap < SUBLANE:
            continue
        TB = _pick_batch_tile(Bpad8, tb_cap)
        if best is None or (TB, TK) > best:
            best = (TB, TK)
    if best is None:
        # TODO(synk): input_size too large for the VMEM budget even at TK=128;
        # fall back to minimal batch tile and rely on vmem_limit_bytes headroom.
        best = (SUBLANE, D)
    TB, TK = best
    nk = max(1, D // TK)
    nb = Bpad8 // TB

    # v7x has 2 TensorCores: avoid a 1-step batch grid when the batch is big
    # enough that splitting it is worthwhile (no-op on v5e/v6e and tiny B).
    if nb == 1 and Bpad8 >= 256:
        TB = _pick_batch_tile(Bpad8, max(SUBLANE, Bpad8 // 2))
        nb = Bpad8 // TB

    need = (2 * TB * TK * xi + 2 * TK * Lpad * wi + 2 * Lpad * bias.dtype.itemsize
            + 2 * TB * Lpad * oi + TB * Lpad * 4)
    vmem_limit = int(min(64 << 20, max(32 << 20, need + (4 << 20))))

    grid = (nb, nk)

    out_pad = pl.pallas_call(
        _linear_kernel,
        out_shape=jax.ShapeDtypeStruct((Bpad8, Lpad), x.dtype),
        grid_spec=pltpu.PrefetchScalarGridSpec(
            num_scalar_prefetch=0,
            grid=grid,
            in_specs=[
                pl.BlockSpec((TB, TK), lambda i, k: (i, k)),     # x: batch x K tiles
                pl.BlockSpec((TK, Lpad), lambda i, k: (k, 0)),   # W.T: K tiles, lane-dense N
                pl.BlockSpec((1, Lpad), lambda i, k: (0, 0)),    # bias: constant -> resident
            ],
            out_specs=pl.BlockSpec((TB, Lpad), lambda i, k: (i, 0)),
            scratch_shapes=[pltpu.VMEM((TB, Lpad), jnp.float32)],  # f32 accumulator
        ),
        compiler_params=pltpu.CompilerParams(
            dimension_semantics=("parallel", "arbitrary"),
            vmem_limit_bytes=vmem_limit,
        ),
    )(x, w_t, b_pad)

    # Padded rows/columns are zeros; slice them off here to match nn.Linear.
    # TODO(synk): for a real deployment fuse the downstream softmax/argmax over
    # the L labels into the kernel epilogue (or consume the [*, Lpad] slab
    # directly) to avoid this extra pass over the output.
    return out_pad[:B, :L]


def reference_forward(x, weight, bias):
    return x @ weight.T + bias[None, :]


if __name__ == "__main__":
    # Small shapes consistent with the module's forward pass; batch=10 also
    # exercises the sublane-pad (10 -> 16 rows) and the output slice path.
    batch = 10
    input_size = 32
    num_labels = 4

    key = jax.random.PRNGKey(0)
    kx, kw, kb = jax.random.split(key, 3)

    x = jax.random.normal(kx, (batch, input_size), dtype=jnp.float32)
    weight = jax.random.normal(kw, (num_labels, input_size), dtype=jnp.float32) * 0.1
    bias = jax.random.normal(kb, (num_labels,), dtype=jnp.float32) * 0.1

    out = sentiment_classifier_forward(x, weight, bias)
    out = jax.block_until_ready(out)

    ref = reference_forward(x, weight, bias)
    assert out.shape == (batch, num_labels)
    assert jnp.allclose(out, ref, atol=1e-5, rtol=1e-5), "mismatch vs reference"

    print("KERNEL_OK")
</pallas_src>

<mosaic_0001>
module attributes {stable_mosaic.version = 11 : i64} {
  func.func @_linear_kernel(%arg0: i32, %arg1: i32, %arg2: memref<16x32xf32, #tpu.memory_space<vmem>>, %arg3: memref<32x128xf32, #tpu.memory_space<vmem>>, %arg4: memref<1x128xf32, #tpu.memory_space<vmem>>, %arg5: memref<16x128xf32, #tpu.memory_space<vmem>>, %arg6: memref<16x128xf32, #tpu.memory_space<vmem>>) attributes {dimension_semantics = [#tpu.dimension_semantics<parallel>, #tpu.dimension_semantics<arbitrary>], iteration_bounds = array<i64: 1, 1>, scalar_prefetch = 0 : i64, scratch_operands = 1 : i64, tpu.core_type = #tpu.core_type<tc>, window_params = [{transform_indices = @transform_0, window_bounds = array<i64: 16, 32>}, {transform_indices = @transform_1, window_bounds = array<i64: 32, 128>}, {pipeline_mode = #tpu.pipeline_mode<synchronous>, transform_indices = @transform_2, window_bounds = array<i64: 1, 128>}, {transform_indices = @transform_3, window_bounds = array<i64: 16, 128>}]} {
    %c0_i32 = arith.constant 0 : i32
    %0 = arith.cmpi eq, %arg1, %c0_i32 : i32
    %1 = arith.extui %0 : i1 to i32
    %c0_i32_0 = arith.constant 0 : i32
    %2 = arith.cmpi ne, %1, %c0_i32_0 : i32
    scf.if %2 {
      %cst_10 = arith.constant 0.000000e+00 : f32
      %12 = vector.broadcast %cst_10 : f32 to vector<16x128xf32>
      %c0_11 = arith.constant 0 : index
      %c0_12 = arith.constant 0 : index
      %13 = vector.load %arg6[%c0_11, %c0_12] : memref<16x128xf32, #tpu.memory_space<vmem>>, vector<16x128xf32>
      tpu.vector_store %arg6[%c0_11, %c0_12], %12 {strides = array<i32>} : memref<16x128xf32, #tpu.memory_space<vmem>>, vector<16x128xf32>,
    } else {
    }
    %c0 = arith.constant 0 : index
    %c0_1 = arith.constant 0 : index
    %3 = vector.load %arg6[%c0, %c0_1] : memref<16x128xf32, #tpu.memory_space<vmem>>, vector<16x128xf32>
    %c0_2 = arith.constant 0 : index
    %c0_3 = arith.constant 0 : index
    %4 = vector.load %arg2[%c0_2, %c0_3] : memref<16x32xf32, #tpu.memory_space<vmem>>, vector<16x32xf32>
    %c0_4 = arith.constant 0 : index
    %c0_5 = arith.constant 0 : index
    %5 = vector.load %arg3[%c0_4, %c0_5] : memref<32x128xf32, #tpu.memory_space<vmem>>, vector<32x128xf32>
    %cst = arith.constant dense<0.000000e+00> : vector<16x128xf32>
    %6 = tpu.matmul %4, %5, %cst {dimension_numbers = #tpu.dot_dimension_numbers<[1], [0], [0], [1], [0, 0, 1, 1], [], []>} : vector<16x32xf32>, vector<32x128xf32>, vector<16x128xf32> -> vector<16x128xf32>
    %7 = arith.addf %3, %6 : vector<16x128xf32>
    %c0_6 = arith.constant 0 : index
    %c0_7 = arith.constant 0 : index
    %8 = vector.load %arg6[%c0_6, %c0_7] : memref<16x128xf32, #tpu.memory_space<vmem>>, vector<16x128xf32>
    tpu.vector_store %arg6[%c0_6, %c0_7], %7 {strides = array<i32>} : memref<16x128xf32, #tpu.memory_space<vmem>>, vector<16x128xf32>,
    %c0_i32_8 = arith.constant 0 : i32
    %9 = arith.cmpi eq, %arg1, %c0_i32_8 : i32
    %10 = arith.extui %9 : i1 to i32
    %c0_i32_9 = arith.constant 0 : i32
    %11 = arith.cmpi ne, %10, %c0_i32_9 : i32
    scf.if %11 {
      %c0_10 = arith.constant 0 : index
      %c0_11 = arith.constant 0 : index
      %12 = vector.load %arg6[%c0_10, %c0_11] : memref<16x128xf32, #tpu.memory_space<vmem>>, vector<16x128xf32>
      %c0_12 = arith.constant 0 : index
      %c0_13 = arith.constant 0 : index
      %13 = vector.load %arg4[%c0_12, %c0_13] : memref<1x128xf32, #tpu.memory_space<vmem>>, vector<1x128xf32>
      %14 = vector.broadcast %13 : vector<1x128xf32> to vector<16x128xf32>
      %15 = arith.addf %12, %14 : vector<16x128xf32>
      %c0_14 = arith.constant 0 : index
      %c0_15 = arith.constant 0 : index
      %16 = vector.load %arg5[%c0_14, %c0_15] : memref<16x128xf32, #tpu.memory_space<vmem>>, vector<16x128xf32>
      tpu.vector_store %arg5[%c0_14, %c0_15], %15 {strides = array<i32>} : memref<16x128xf32, #tpu.memory_space<vmem>>, vector<16x128xf32>,
    } else {
    }
    return
  }
  func.func @transform_0(%arg0: i32, %arg1: i32) -> (i32, i32) {
    %c0_i32 = arith.constant 0 : i32
    return %arg0, %arg1 : i32, i32
  }
  func.func @transform_1(%arg0: i32, %arg1: i32) -> (i32, i32) {
    %c0_i32 = arith.constant 0 : i32
    %c0_i32_0 = arith.constant 0 : i32
    return %arg1, %c0_i32 : i32, i32
  }
  func.func @transform_2(%arg0: i32, %arg1: i32) -> (i32, i32) {
    %c0_i32 = arith.constant 0 : i32
    %c0_i32_0 = arith.constant 0 : i32
    %c0_i32_1 = arith.constant 0 : i32
    return %c0_i32, %c0_i32_0 : i32, i32
  }
  func.func @transform_3(%arg0: i32, %arg1: i32) -> (i32, i32) {
    %c0_i32 = arith.constant 0 : i32
    %c0_i32_0 = arith.constant 0 : i32
    return %arg0, %c0_i32 : i32, i32
  }
}

</mosaic_0001>

<bundles_post_ra>
// kernel: tpu_custom_call.1
= control target key start
LH: loop header
LB: loop body
LE: loop exit
PB: predicated region body
PF: predicated region fallthrough
CT: control target
= control target key end

     0   :  { %8 = vsyncpa [#allocation4], 0  ;;  %s355_s0 = inlined_call_operand.hbm [shape: f32[16,32], index: 0, kind: input, shape index: {}]   ;;  %s356_s1 = inlined_call_operand.hbm [shape: f32[32,128], index: 1, kind: input, shape index: {}]   ;;  %s357_s2 = inlined_call_operand.vmem [shape: f32[1,128], index: 2, kind: input, shape index: {}]   ;;  %s358_s3 = inlined_call_operand.hbm [shape: f32[16,128], index: 3, kind: output, shape index: {}]  }
   0x1   :  { %9 = vsyncpa [#allocation7], 0 }
   0x2   :  { %10 = vsyncpa [#allocation5], 0  ;;  %s282_s12 = smov [#allocation3]   ;;  %s210_s16 = scalar_lea.hbm %s355_s0, 256 }
   0x3   :  { %s16_s13 = sshll.u32 %s282_s12, 4  ;;  %p211_p0 = scmp.ne.s32.totalorder %s355_s0, %s210_s16  ;;  %s17_s13 = int_to_ptr.vmem [resolvable:$true] %s16_s13 }
   0x4   :  { %p214_p1 = scmp.lt.u32.totalorder %s210_s16, %s355_s0 }
   0x6   :  { %p216_p2 = pnand %p214_p1, %p211_p0 }
   0x8   :  { %219 = shalt.err (!%p216_p2)
}
   0x9   :  { %s220_s21 = scalar_lea.vmem %s17_s13, 256  ;;  %p225_p4 = scmp.lt.s32.totalorder %s17_s13, %s17_s13 }
   0xa   :  { %p221_p3 = scmp.ne.s32.totalorder %s17_s13, %s220_s21  ;;  %p226_p5 = scmp.lt.s32.totalorder %s220_s21, %s220_s21 }
   0xc   :  { %p227_p6 = por %p226_p5, %p225_p4 }
   0xe   :  { %p228_p7 = pnand %p227_p6, %p221_p3 }
  0x10   :  { %231 = shalt.err (!%p228_p7)
}
  0x11   :  { %s283_s22 = smov 128   ;;  %s284_s23 = smov 8  }
  0x12   :  { %22 = dma.hbm_to_vmem [thread:$0]  %s355_s0, 256, %s17_s13, [#allocation4], %s283_s22, %s283_s22, %s284_s23  }
  0x13   :  { %s285_s26 = smov [#allocation6]   ;;  %s232_s30 = scalar_lea.hbm %s356_s1, 512 }
  0x14   :  { %s28_s27 = sshll.u32 %s285_s26, 4  ;;  %p233_p8 = scmp.ne.s32.totalorder %s356_s1, %s232_s30  ;;  %s29_s27 = int_to_ptr.vmem [resolvable:$true] %s28_s27 }
  0x15   :  { %p236_p9 = scmp.lt.u32.totalorder %s232_s30, %s356_s1 }
  0x17   :  { %p238_p10 = pnand %p236_p9, %p233_p8 }
  0x19   :  { %241 = shalt.err (!%p238_p10)
}
  0x1a   :  { %s242_s8 = scalar_lea.vmem %s29_s27, 512  ;;  %p247_p12 = scmp.lt.s32.totalorder %s29_s27, %s29_s27 }
  0x1b   :  { %p243_p11 = scmp.ne.s32.totalorder %s29_s27, %s242_s8  ;;  %p248_p13 = scmp.lt.s32.totalorder %s242_s8, %s242_s8 }
  0x1d   :  { %p249_p0 = por %p248_p13, %p247_p12 }
  0x1f   :  { %p250_p1 = pnand %p249_p0, %p243_p11 }
  0x21   :  { %253 = shalt.err (!%p250_p1)
}
  0x22   :  { %34 = dma.hbm_to_vmem [thread:$0]  %s356_s1, 512, %s29_s27, [#allocation7], %s283_s22, %s283_s22, %s284_s23  }
  0x23   :  { %276 = dma.done.wait [#allocation4], 256  }
  0x24   :  { %277 = vsyncadd [#allocation4], 4294967040 }
  0x25   :  { %278 = dma.done.wait [#allocation7], 512  }
  0x26   :  { %279 = vsyncadd [#allocation7], 4294966784  ;;  %vm57_vm0 = vcmask 261120   ;;  %v53_v0 = vld [vmem:[#allocation6] sm:$0xff]  ;;  %v54_v1 = vld [vmem:[#allocation6 + $0x8] sm:$0xff]  ;;  %s286_s11 = smov [#allocation8]  }
  0x27   :  { %v55_v2 = vld [vmem:[#allocation6 + $0x10] sm:$0xff]  ;;  %v197_v3 = vpack.c.bf16 %v54_v1, %v53_v0  ;;  %v56_v4 = vld [vmem:[#allocation6 + $0x18] sm:$0xff]  ;;  %s164_s12 = sshll.u32 %s286_s11, 4  ;;  %s165_s12 = int_to_ptr.vmem [resolvable:$true] %s164_s12 }
  0x28   :  { %v51_v5 = vld [vmem:[#allocation3] sm:$0xff]  ;;  %v201_v6 = vpack.c.bf16 %v56_v4, %v55_v2  ;;  %v52_v7 = vld [vmem:[#allocation3 + $0x8] sm:$0xff]  ;;  %s254_s13 = scalar_lea.vmem %s165_s12, 256  ;;  %p259_p3 = scmp.lt.s32.totalorder %s165_s12, %s165_s12 }
  0x29   :  { %194 = vmatprep.mubr.msk.f32.mxu0 %vm57_vm0, %v51_v5  ;;  %198 = vmatprep.subr.bf16.mxu0 %v197_v3  ;;  %v179_v8 = vld [vmem:[%s357_s2] ss:$0 sm:$0xff]  ;;  %p255_p2 = scmp.ne.s32.totalorder %s165_s12, %s254_s13  ;;  %p260_p4 = scmp.lt.s32.totalorder %s254_s13, %s254_s13 }
  0x2a   :  { %200 = vmatpush3.bf16.msra.mxu0 %v197_v3 }
  0x2b   :  { %202 = vmatprep.subr.bf16.mxu0 %v201_v6  ;;  %p261_p5 = por %p260_p4, %p259_p3 }
  0x2d   :  { %p262_p6 = pnand %p261_p5, %p255_p2 }
  0x2e   :  { %204 = vmatpush3.bf16.msra.mxu0 %v201_v6 }
  0x31   :  { %195 = vmatmul.mubr.msk.f32.vlgmr.msra.gmra.mrb[0].mxu0 %vm57_vm0, %v52_v7 }
 0x104   :  { %v196_v9 = vpop.f32.mrb[0].mxu0 }
 0x105   :  { %v156_v10 = vadd.f32 %v196_v9, %v179_v8  ;;  %v130_v11 = vpop.f32.mrb[1].mxu0 }
 0x106   :  { %v155_v12 = vadd.f32 %v179_v8, %v130_v11 }
 0x107   :  { %158 = vst [vmem:[#allocation8 + $0x8] sm:$0xff] %v156_v10 }
 0x108   :  { %157 = vst [vmem:[#allocation8] sm:$0xff] %v155_v12 }
 0x109   :  { %265 = shalt.err (!%p262_p6)
}
 0x10a   :  { %s266_s2 = scalar_lea.hbm %s358_s3, 256 }
 0x10b   :  { %p267_p7 = scmp.ne.s32.totalorder %s358_s3, %s266_s2  ;;  %p270_p8 = scmp.lt.u32.totalorder %s266_s2, %s358_s3 }
 0x10d   :  { %p272_p9 = pnand %p270_p8, %p267_p7 }
 0x10f   :  { %275 = shalt.err (!%p272_p9)
}
 0x110   :  { %170 = dma.vmem_to_hbm [thread:$0]  %s165_s12, 256, %s358_s3, [#allocation5], %s283_s22, %s283_s22, %s284_s23  }
 0x111   :  { %280 = dma.done.wait [#allocation5], 256  }
 0x112   :  { %281 = vsyncadd [#allocation5], 4294967040 }
 0x113   :  { %174 = vsyncpa [#allocation4], 1 }
 0x114   :  { %175 = vsyncpa [#allocation7], 1 }
 0x115   :  { %176 = vsyncpa [#allocation5], 1 }

</bundles_post_ra>
